<compile_context>
chip_gen: v5e
topology: v5e:2x2
jax: 0.10.0
libtpu: 0.0.40
codegen_flags: <defaults>
</compile_context>

<pallas_src>
import jax
import jax.numpy as jnp
from jax.experimental import pallas as pl
from jax.experimental.pallas import tpu as pltpu


# ----------------------------- kernel bodies ------------------------------ #

def _logit_and_hidden(feat_ref, wy_ref, lin_w_ref, lin_b_ref, w1_ref, b1_ref,
                      out_ref):
    """Shared front half: LinearDiscriminator logit + packed hidden layer."""
    x_bf = feat_ref[...]                               # (TB, d_penul) bf16
    x = x_bf.astype(jnp.float32)
    wy = wy_ref[...].astype(jnp.float32)

    # LinearDiscriminator logit, f32 on the VPU + one XLU lane reduction:
    #   d = x @ lin_w + lin_b + sum(x * w_y)  ==  sum(x * (lin_w_row + w_y)) + lin_b
    # (summation-order reordering only; documented f32-rounding difference)
    d = jnp.sum(x * (lin_w_ref[...] + wy), axis=1, keepdims=True)
    out_ref[...] = d + lin_b_ref[0, 0]                 # (TB, 1) f32

    # Shared hidden layer for both packed projection heads (bf16 MXU, f32 acc).
    h = jnp.dot(x_bf, w1_ref[...], preferred_element_type=jnp.float32) + b1_ref[...]
    h = jnp.maximum(h, 0.1 * h)                        # LeakyReLU(0.1): 2 VPU ops
    return h.astype(jnp.bfloat16)                      # (TB, 2*d_hidden) bf16


def _kernel_packed(feat_ref, wy_ref, lin_w_ref, lin_b_ref, w1_ref, b1_ref,
                   w2_ref, b2_ref, out_ref, proj_ref):
    """v6e/v7x: single 256-wide block-diagonal layer-2 matmul."""
    h_bf = _logit_and_hidden(feat_ref, wy_ref, lin_w_ref, lin_b_ref,
                             w1_ref, b1_ref, out_ref)
    p = jnp.dot(h_bf, w2_ref[...], preferred_element_type=jnp.float32) + b2_ref[...]
    proj_ref[...] = p.astype(proj_ref.dtype)           # (TB, 2*d_project)


def _kernel_split(feat_ref, wy_ref, lin_w_ref, lin_b_ref, w1_ref, b1_ref,
                  w2a_ref, w2b_ref, b2_ref, out_ref, proj_ref):
    """v5e-class chips: two dense 128-wide layer-2 matmuls (no structural zeros)."""
    h_bf = _logit_and_hidden(feat_ref, wy_ref, lin_w_ref, lin_b_ref,
                             w1_ref, b1_ref, out_ref)
    dh = w2a_ref.shape[0]
    p1 = jnp.dot(h_bf[:, :dh], w2a_ref[...], preferred_element_type=jnp.float32)
    p2 = jnp.dot(h_bf[:, dh:], w2b_ref[...], preferred_element_type=jnp.float32)
    p = jnp.concatenate([p1, p2], axis=1) + b2_ref[...]
    proj_ref[...] = p.astype(proj_ref.dtype)


# ------------------------------ host helpers ------------------------------ #

def _round_up(x, m):
    return ((x + m - 1) // m) * m


def _default_split_l2():
    """Packed 256-wide layer 2 on 256x256-MXU chips (v6e/v7x); split elsewhere."""
    try:
        kind = jax.devices()[0].device_kind.lower()
    except Exception:
        return False
    return not ("v6" in kind or "v7" in kind or "7x" in kind)


def _vmem_limit_bytes(tile_b, d_penul, d_hidden2, d_project2, proj_itemsize):
    stream_in = 2 * 2 * tile_b * d_penul * 2                   # feat + wy, bf16, 2 bufs
    stream_out = 2 * tile_b * (d_project2 * proj_itemsize + 4)  # proj + logit, 2 bufs
    weights = 2 * (d_penul * d_hidden2 * 2 + d_hidden2 * d_project2 * 2
                   + (d_penul + d_hidden2 + d_project2 + 1) * 4)
    total = stream_in + stream_out + weights + (8 << 20)        # compiler headroom
    return int(min(max(total, 16 << 20), 48 << 20))             # <= v7x 64 MiB physical


def pack_params(p):
    """One-time repack of per-head weights into MXU-friendly fused layouts."""
    d_hidden = p["p1_w1"].shape[1]
    d_project = p["p1_w2"].shape[1]
    w1_cat = jnp.concatenate([p["p1_w1"], p["p2_w1"]], axis=1).astype(jnp.bfloat16)
    b1_cat = jnp.concatenate([p["p1_b1"], p["p2_b1"]], axis=1)          # (1, 2*dh) f32
    w2a = p["p1_w2"].astype(jnp.bfloat16)                               # (dh, dp)
    w2b = p["p2_w2"].astype(jnp.bfloat16)                               # (dh, dp)
    w2_blk = jnp.zeros((2 * d_hidden, 2 * d_project), jnp.bfloat16)
    w2_blk = w2_blk.at[:d_hidden, :d_project].set(w2a)
    w2_blk = w2_blk.at[d_hidden:, d_project:].set(w2b)
    b2_cat = jnp.concatenate([p["p1_b2"], p["p2_b2"]], axis=1)          # (1, 2*dp) f32
    return dict(
        lin_w_row=p["lin_w"].T,                 # (1, d_penul) f32, sublane-broadcast
        lin_b=p["lin_b"].reshape(1, 1),         # (1, 1) f32, SMEM scalar
        w1_cat=w1_cat, b1_cat=b1_cat,
        w2_blk=w2_blk, w2a=w2a, w2b=w2b, b2_cat=b2_cat,
        d_hidden=d_hidden, d_project=d_project,
    )


def _xla_forward(features, w_y, packed, proj_dtype=jnp.bfloat16):
    """Small-batch bypass: plain XLA ops, numerically matching the kernel."""
    x_bf = features.astype(jnp.bfloat16)
    x = x_bf.astype(jnp.float32)
    wy = w_y.astype(jnp.bfloat16).astype(jnp.float32)
    d = jnp.sum(x * (packed["lin_w_row"] + wy), axis=1, keepdims=True) \
        + packed["lin_b"][0, 0]
    h = jnp.dot(x_bf, packed["w1_cat"], preferred_element_type=jnp.float32) \
        + packed["b1_cat"]
    h = jnp.maximum(h, 0.1 * h).astype(jnp.bfloat16)
    dh, dp = packed["d_hidden"], packed["d_project"]
    p1 = jnp.dot(h[:, :dh], packed["w2a"], preferred_element_type=jnp.float32) \
        + packed["b2_cat"][:, :dp]
    p2 = jnp.dot(h[:, dh:], packed["w2b"], preferred_element_type=jnp.float32) \
        + packed["b2_cat"][:, dp:]
    return d, p1.astype(proj_dtype), p2.astype(proj_dtype)


def base_discriminator_forward(features, w_y, packed, *, tile_b=None,
                               proj_dtype=jnp.bfloat16, split_l2=None,
                               min_kernel_batch=128):
    """features: (B, d_penul); w_y: (B, d_penul) embedding rows for labels y.

    Returns (logit (B,1) f32, proj1 (B,d_project), proj2 (B,d_project)).
    """
    B, d_penul = features.shape
    d_hidden = packed["d_hidden"]
    d_project = packed["d_project"]
    d_hidden2, d_project2 = 2 * d_hidden, 2 * d_project

    # Small-batch bypass: at B << 128 the pallas_call fixed cost dominates.
    if B < min_kernel_batch:
        return _xla_forward(features, w_y, packed, proj_dtype)

    if split_l2 is None:
        split_l2 = _default_split_l2()

    # Stream the two per-step HBM inputs as bf16 (documented accuracy relaxation).
    feats_bf = features.astype(jnp.bfloat16)
    wy_bf = w_y.astype(jnp.bfloat16)

    # Big batch tiles: memory-bound kernel, per-grid-step overhead ~0.35 us.
    if tile_b is None:
        tile_b = min(512, _round_up(B, 8))
    tile_b = _round_up(tile_b, 8)
    B_pad = _round_up(B, tile_b)
    if B_pad != B:                                    # general-B support via padding
        pad = B_pad - B
        feats_bf = jnp.pad(feats_bf, ((0, pad), (0, 0)))
        wy_bf = jnp.pad(wy_bf, ((0, pad), (0, 0)))
    grid = (B_pad // tile_b,)

    smem = pl.BlockSpec(memory_space=pltpu.MemorySpace.SMEM)
    in_specs = [
        pl.BlockSpec((tile_b, d_penul), lambda i: (i, 0)),          # features (bf16)
        pl.BlockSpec((tile_b, d_penul), lambda i: (i, 0)),          # w_y (bf16)
        pl.BlockSpec((1, d_penul), lambda i: (0, 0)),               # lin_w_row (resident)
        smem,                                                       # lin_b scalar
        pl.BlockSpec((d_penul, d_hidden2), lambda i: (0, 0)),       # w1_cat (resident)
        pl.BlockSpec((1, d_hidden2), lambda i: (0, 0)),             # b1_cat
    ]
    if split_l2:
        kernel = _kernel_split
        in_specs += [pl.BlockSpec((d_hidden, d_project), lambda i: (0, 0)),
                     pl.BlockSpec((d_hidden, d_project), lambda i: (0, 0))]
        w2_args = (packed["w2a"], packed["w2b"])
    else:
        kernel = _kernel_packed
        in_specs += [pl.BlockSpec((d_hidden2, d_project2), lambda i: (0, 0))]
        w2_args = (packed["w2_blk"],)
    in_specs += [pl.BlockSpec((1, d_project2), lambda i: (0, 0))]   # b2_cat

    out_specs = (
        pl.BlockSpec((tile_b, 1), lambda i: (i, 0)),                # logit
        pl.BlockSpec((tile_b, d_project2), lambda i: (i, 0)),       # packed proj slab
    )
    out_shapes = (
        jax.ShapeDtypeStruct((B_pad, 1), jnp.float32),
        jax.ShapeDtypeStruct((B_pad, d_project2), proj_dtype),
    )

    vmem_limit = _vmem_limit_bytes(tile_b, d_penul, d_hidden2, d_project2,
                                   jnp.dtype(proj_dtype).itemsize)

    out, proj_cat = pl.pallas_call(
        kernel,
        grid=grid,
        in_specs=in_specs,
        out_specs=out_specs,
        out_shape=out_shapes,
        compiler_params=pltpu.CompilerParams(
            dimension_semantics=("parallel",),   # sharded across TCs on v7x
            vmem_limit_bytes=vmem_limit,
        ),
    )(feats_bf, wy_bf,
      packed["lin_w_row"], packed["lin_b"],
      packed["w1_cat"], packed["b1_cat"],
      *w2_args, packed["b2_cat"])

    out = out[:B]
    proj1 = proj_cat[:B, :d_project]
    proj2 = proj_cat[:B, d_project:]
    return out, proj1, proj2


# --------------------------- params / reference --------------------------- #

def _init_linear(key, fan_in, fan_out):
    # PyTorch nn.Linear default init: U(-1/sqrt(fan_in), 1/sqrt(fan_in))
    kw, kb = jax.random.split(key)
    bound = 1.0 / jnp.sqrt(fan_in)
    w = jax.random.uniform(kw, (fan_in, fan_out), jnp.float32, -bound, bound)
    b = jax.random.uniform(kb, (1, fan_out), jnp.float32, -bound, bound)
    return w, b


def init_params(key, d_penul, d_hidden, d_project, n_classes):
    keys = jax.random.split(key, 6)
    lin_w, lin_b = _init_linear(keys[0], d_penul, 1)
    p1_w1, p1_b1 = _init_linear(keys[1], d_penul, d_hidden)
    p1_w2, p1_b2 = _init_linear(keys[2], d_hidden, d_project)
    p2_w1, p2_b1 = _init_linear(keys[3], d_penul, d_hidden)
    p2_w2, p2_b2 = _init_linear(keys[4], d_hidden, d_project)
    emb = jax.random.normal(keys[5], (n_classes, d_penul), jnp.float32)  # nn.Embedding N(0,1)
    return dict(lin_w=lin_w, lin_b=lin_b,
                p1_w1=p1_w1, p1_b1=p1_b1, p1_w2=p1_w2, p1_b2=p1_b2,
                p2_w1=p2_w1, p2_b1=p2_b1, p2_w2=p2_w2, p2_b2=p2_b2,
                emb=emb)


def _reference(features, w_y, p, quantize=False):
    """Pure-JAX reference for BaseDiscriminator.forward.

    quantize=True rounds the streamed inputs / projection weights to bf16 (the
    kernel's deliberate relaxation) but does all math in f32 — used for the
    tight correctness check of the kernel's own arithmetic.
    """
    q = (lambda a: a.astype(jnp.bfloat16).astype(jnp.float32)) if quantize \
        else (lambda a: a)
    x, wy = q(features), q(w_y)
    d = x @ p["lin_w"] + p["lin_b"] + jnp.sum(x * wy, axis=1, keepdims=True)

    def head(w1, b1, w2, b2):
        h = x @ q(w1) + b1
        h = jnp.where(h > 0, h, 0.1 * h)               # LeakyReLU(0.1)
        return h @ q(w2) + b2

    p1 = head(p["p1_w1"], p["p1_b1"], p["p1_w2"], p["p1_b2"])
    p2 = head(p["p2_w1"], p["p2_b1"], p["p2_w2"], p["p2_b2"])
    # _nuisance = (p1.mean() + p2.mean()) * 0.0 is exactly zero -> omitted
    return d, p1, p2


# ---------------------------------- demo ----------------------------------- #

if __name__ == "__main__":
    B, D_PENUL, D_HIDDEN, D_PROJECT, N_CLASSES = 256, 128, 128, 128, 10

    key = jax.random.PRNGKey(0)
    k_feat, k_y, k_params = jax.random.split(key, 3)

    params = init_params(k_params, D_PENUL, D_HIDDEN, D_PROJECT, N_CLASSES)
    packed = pack_params(params)
    features = jax.random.normal(k_feat, (B, D_PENUL), jnp.float32)
    y = jax.random.randint(k_y, (B,), 0, N_CLASSES)
    w_y = params["emb"][y]                  # embedding gather (glue, plain JAX)

    # Kernel path (tile_b=128 here just to exercise a multi-step grid at this
    # small demo batch; the production default is 512-row tiles).
    out, proj1, proj2 = base_discriminator_forward(features, w_y, packed, tile_b=128)
    jax.block_until_ready((out, proj1, proj2))

    # Tight check: f32 reference on the same bf16-quantized inputs / weights
    # (validates the kernel arithmetic itself).
    ref_dq, ref_p1q, ref_p2q = _reference(features, w_y, params, quantize=True)
    assert jnp.allclose(out, ref_dq, atol=1e-2, rtol=1e-3)
    assert jnp.allclose(proj1.astype(jnp.float32), ref_p1q, atol=1e-2, rtol=1e-2)
    assert jnp.allclose(proj2.astype(jnp.float32), ref_p2q, atol=1e-2, rtol=1e-2)

    # Loose check: full-f32 reference (documents the bf16 streaming relaxation).
    ref_d, ref_p1, ref_p2 = _reference(features, w_y, params, quantize=False)
    assert jnp.allclose(out, ref_d, atol=5e-1, rtol=5e-2)
    assert jnp.allclose(proj1.astype(jnp.float32), ref_p1, atol=5e-1, rtol=5e-2)
    assert jnp.allclose(proj2.astype(jnp.float32), ref_p2, atol=5e-1, rtol=5e-2)

    # Small-batch bypass path (B=8 < 128 -> plain XLA, same numerics).
    out_s, p1_s, p2_s = base_discriminator_forward(features[:8], w_y[:8], packed)
    jax.block_until_ready((out_s, p1_s, p2_s))
    assert jnp.allclose(out_s, ref_dq[:8], atol=1e-2, rtol=1e-3)
    assert jnp.allclose(p1_s.astype(jnp.float32), ref_p1q[:8], atol=1e-2, rtol=1e-2)
    assert jnp.allclose(p2_s.astype(jnp.float32), ref_p2q[:8], atol=1e-2, rtol=1e-2)

    print("KERNEL_OK")
</pallas_src>

<mosaic_0001>
module attributes {stable_mosaic.version = 11 : i64} {
  func.func @_kernel_split(%arg0: i32, %arg1: memref<128x128xbf16, #tpu.memory_space<vmem>>, %arg2: memref<128x128xbf16, #tpu.memory_space<vmem>>, %arg3: memref<1x128xf32, #tpu.memory_space<vmem>>, %arg4: memref<1x1xf32, #tpu.memory_space<smem>>, %arg5: memref<128x256xbf16, #tpu.memory_space<vmem>>, %arg6: memref<1x256xf32, #tpu.memory_space<vmem>>, %arg7: memref<128x128xbf16, #tpu.memory_space<vmem>>, %arg8: memref<128x128xbf16, #tpu.memory_space<vmem>>, %arg9: memref<1x256xf32, #tpu.memory_space<vmem>>, %arg10: memref<128x1xf32, #tpu.memory_space<vmem>>, %arg11: memref<128x256xbf16, #tpu.memory_space<vmem>>) attributes {dimension_semantics = [#tpu.dimension_semantics<parallel>], iteration_bounds = array<i64: 2>, scalar_prefetch = 0 : i64, scratch_operands = 0 : i64, tpu.core_type = #tpu.core_type<tc>, window_params = [{transform_indices = @transform_0, window_bounds = array<i64: 128, 128>}, {transform_indices = @transform_1, window_bounds = array<i64: 128, 128>}, {pipeline_mode = #tpu.pipeline_mode<synchronous>, transform_indices = @transform_2, window_bounds = array<i64: 1, 128>}, {transform_indices = @transform_3, window_bounds = array<i64: 1, 1>}, {pipeline_mode = #tpu.pipeline_mode<synchronous>, transform_indices = @transform_4, window_bounds = array<i64: 128, 256>}, {pipeline_mode = #tpu.pipeline_mode<synchronous>, transform_indices = @transform_5, window_bounds = array<i64: 1, 256>}, {pipeline_mode = #tpu.pipeline_mode<synchronous>, transform_indices = @transform_6, window_bounds = array<i64: 128, 128>}, {pipeline_mode = #tpu.pipeline_mode<synchronous>, transform_indices = @transform_7, window_bounds = array<i64: 128, 128>}, {pipeline_mode = #tpu.pipeline_mode<synchronous>, transform_indices = @transform_8, window_bounds = array<i64: 1, 256>}, {transform_indices = @transform_9, window_bounds = array<i64: 128, 1>}, {transform_indices = @transform_10, window_bounds = array<i64: 128, 256>}]} {
    %c0 = arith.constant 0 : index
    %c0_0 = arith.constant 0 : index
    %0 = vector.load %arg1[%c0, %c0_0] : memref<128x128xbf16, #tpu.memory_space<vmem>>, vector<128x128xbf16>
    %1 = arith.extf %0 : vector<128x128xbf16> to vector<128x128xf32>
    %c0_1 = arith.constant 0 : index
    %c0_2 = arith.constant 0 : index
    %2 = vector.load %arg2[%c0_1, %c0_2] : memref<128x128xbf16, #tpu.memory_space<vmem>>, vector<128x128xbf16>
    %3 = arith.extf %2 : vector<128x128xbf16> to vector<128x128xf32>
    %c0_3 = arith.constant 0 : index
    %c0_4 = arith.constant 0 : index
    %4 = vector.load %arg3[%c0_3, %c0_4] : memref<1x128xf32, #tpu.memory_space<vmem>>, vector<1x128xf32>
    %5 = vector.broadcast %4 : vector<1x128xf32> to vector<128x128xf32>
    %6 = arith.addf %5, %3 : vector<128x128xf32>
    %7 = arith.mulf %1, %6 : vector<128x128xf32>
    %cst = arith.constant dense<0.000000e+00> : vector<128xf32>
    %8 = vector.multi_reduction <add>, %7, %cst [1] : vector<128x128xf32> to vector<128xf32>
    %9 = vector.shape_cast %8 : vector<128xf32> to vector<128x1xf32>
    %c0_5 = arith.constant 0 : index
    %c0_6 = arith.constant 0 : index
    %10 = memref.load %arg4[%c0_5, %c0_6] : memref<1x1xf32, #tpu.memory_space<smem>>
    %11 = vector.broadcast %10 : f32 to vector<128x1xf32>
    %12 = arith.addf %9, %11 : vector<128x1xf32>
    %c0_7 = arith.constant 0 : index
    %c0_8 = arith.constant 0 : index
    %13 = vector.load %arg10[%c0_7, %c0_8] : memref<128x1xf32, #tpu.memory_space<vmem>>, vector<128x1xf32>
    tpu.vector_store %arg10[%c0_7, %c0_8], %12 {strides = array<i32>} : memref<128x1xf32, #tpu.memory_space<vmem>>, vector<128x1xf32>,
    %c0_9 = arith.constant 0 : index
    %c0_10 = arith.constant 0 : index
    %14 = vector.load %arg5[%c0_9, %c0_10] : memref<128x256xbf16, #tpu.memory_space<vmem>>, vector<128x256xbf16>
    %cst_11 = arith.constant dense<0.000000e+00> : vector<128x256xf32>
    %15 = tpu.matmul %0, %14, %cst_11 {dimension_numbers = #tpu.dot_dimension_numbers<[1], [0], [0], [1], [0, 0, 1, 1], [], []>} : vector<128x128xbf16>, vector<128x256xbf16>, vector<128x256xf32> -> vector<128x256xf32>
    %c0_12 = arith.constant 0 : index
    %c0_13 = arith.constant 0 : index
    %16 = vector.load %arg6[%c0_12, %c0_13] : memref<1x256xf32, #tpu.memory_space<vmem>>, vector<1x256xf32>
    %17 = vector.broadcast %16 : vector<1x256xf32> to vector<128x256xf32>
    %18 = arith.addf %15, %17 : vector<128x256xf32>
    %cst_14 = arith.constant 1.000000e-01 : f32
    %19 = vector.broadcast %cst_14 : f32 to vector<128x256xf32>
    %20 = arith.mulf %19, %18 : vector<128x256xf32>
    %21 = arith.maximumf %18, %20 : vector<128x256xf32>
    %22 = arith.truncf %21 : vector<128x256xf32> to vector<128x256xbf16>
    %23 = vector.extract_strided_slice %22 {offsets = [0, 0], sizes = [128, 128], strides = [1, 1]} : vector<128x256xbf16> to vector<128x128xbf16>
    %c0_15 = arith.constant 0 : index
    %c0_16 = arith.constant 0 : index
    %24 = vector.load %arg7[%c0_15, %c0_16] : memref<128x128xbf16, #tpu.memory_space<vmem>>, vector<128x128xbf16>
    %cst_17 = arith.constant dense<0.000000e+00> : vector<128x128xf32>
    %25 = tpu.matmul %23, %24, %cst_17 {dimension_numbers = #tpu.dot_dimension_numbers<[1], [0], [0], [1], [0, 0, 1, 1], [], []>} : vector<128x128xbf16>, vector<128x128xbf16>, vector<128x128xf32> -> vector<128x128xf32>
    %26 = vector.extract_strided_slice %22 {offsets = [0, 128], sizes = [128, 128], strides = [1, 1]} : vector<128x256xbf16> to vector<128x128xbf16>
    %c0_18 = arith.constant 0 : index
    %c0_19 = arith.constant 0 : index
    %27 = vector.load %arg8[%c0_18, %c0_19] : memref<128x128xbf16, #tpu.memory_space<vmem>>, vector<128x128xbf16>
    %cst_20 = arith.constant dense<0.000000e+00> : vector<128x128xf32>
    %28 = tpu.matmul %26, %27, %cst_20 {dimension_numbers = #tpu.dot_dimension_numbers<[1], [0], [0], [1], [0, 0, 1, 1], [], []>} : vector<128x128xbf16>, vector<128x128xbf16>, vector<128x128xf32> -> vector<128x128xf32>
    %29 = tpu.concatenate %25, %28 in 1 : vector<128x128xf32>, vector<128x128xf32> -> vector<128x256xf32>
    %c0_21 = arith.constant 0 : index
    %c0_22 = arith.constant 0 : index
    %30 = vector.load %arg9[%c0_21, %c0_22] : memref<1x256xf32, #tpu.memory_space<vmem>>, vector<1x256xf32>
    %31 = vector.broadcast %30 : vector<1x256xf32> to vector<128x256xf32>
    %32 = arith.addf %29, %31 : vector<128x256xf32>
    %33 = arith.truncf %32 : vector<128x256xf32> to vector<128x256xbf16>
    %c0_23 = arith.constant 0 : index
    %c0_24 = arith.constant 0 : index
    %34 = vector.load %arg11[%c0_23, %c0_24] : memref<128x256xbf16, #tpu.memory_space<vmem>>, vector<128x256xbf16>
    tpu.vector_store %arg11[%c0_23, %c0_24], %33 {strides = array<i32>} : memref<128x256xbf16, #tpu.memory_space<vmem>>, vector<128x256xbf16>,
    return
  }
  func.func @transform_0(%arg0: i32) -> (i32, i32) {
    %c0_i32 = arith.constant 0 : i32
    %c0_i32_0 = arith.constant 0 : i32
    return %arg0, %c0_i32 : i32, i32
  }
  func.func @transform_1(%arg0: i32) -> (i32, i32) {
    %c0_i32 = arith.constant 0 : i32
    %c0_i32_0 = arith.constant 0 : i32
    return %arg0, %c0_i32 : i32, i32
  }
  func.func @transform_2(%arg0: i32) -> (i32, i32) {
    %c0_i32 = arith.constant 0 : i32
    %c0_i32_0 = arith.constant 0 : i32
    %c0_i32_1 = arith.constant 0 : i32
    return %c0_i32, %c0_i32_0 : i32, i32
  }
  func.func @transform_3(%arg0: i32) -> (i32, i32) {
    %c0_i32 = arith.constant 0 : i32
    %c0_i32_0 = arith.constant 0 : i32
    %c0_i32_1 = arith.constant 0 : i32
    return %c0_i32, %c0_i32_0 : i32, i32
  }
  func.func @transform_4(%arg0: i32) -> (i32, i32) {
    %c0_i32 = arith.constant 0 : i32
    %c0_i32_0 = arith.constant 0 : i32
    %c0_i32_1 = arith.constant 0 : i32
    return %c0_i32, %c0_i32_0 : i32, i32
  }
  func.func @transform_5(%arg0: i32) -> (i32, i32) {
    %c0_i32 = arith.constant 0 : i32
    %c0_i32_0 = arith.constant 0 : i32
    %c0_i32_1 = arith.constant 0 : i32
    return %c0_i32, %c0_i32_0 : i32, i32
  }
  func.func @transform_6(%arg0: i32) -> (i32, i32) {
    %c0_i32 = arith.constant 0 : i32
    %c0_i32_0 = arith.constant 0 : i32
    %c0_i32_1 = arith.constant 0 : i32
    return %c0_i32, %c0_i32_0 : i32, i32
  }
  func.func @transform_7(%arg0: i32) -> (i32, i32) {
    %c0_i32 = arith.constant 0 : i32
    %c0_i32_0 = arith.constant 0 : i32
    %c0_i32_1 = arith.constant 0 : i32
    return %c0_i32, %c0_i32_0 : i32, i32
  }
  func.func @transform_8(%arg0: i32) -> (i32, i32) {
    %c0_i32 = arith.constant 0 : i32
    %c0_i32_0 = arith.constant 0 : i32
    %c0_i32_1 = arith.constant 0 : i32
    return %c0_i32, %c0_i32_0 : i32, i32
  }
  func.func @transform_9(%arg0: i32) -> (i32, i32) {
    %c0_i32 = arith.constant 0 : i32
    %c0_i32_0 = arith.constant 0 : i32
    return %arg0, %c0_i32 : i32, i32
  }
  func.func @transform_10(%arg0: i32) -> (i32, i32) {
    %c0_i32 = arith.constant 0 : i32
    %c0_i32_0 = arith.constant 0 : i32
    return %arg0, %c0_i32 : i32, i32
  }
}

</mosaic_0001>

<bundles_post_ra>
// kernel: tpu_custom_call.1
= control target key start
LH: loop header
LB: loop body
LE: loop exit
PB: predicated region body
PF: predicated region fallthrough
CT: control target
= control target key end

     0   :  { %s2670_s0 = inlined_call_operand.hbm [shape: bf16[256,128], index: 0, kind: input, shape index: {}]   ;;  %s2671_s1 = inlined_call_operand.hbm [shape: bf16[256,128], index: 1, kind: input, shape index: {}]   ;;  %s2672_s2 = inlined_call_operand.hbm [shape: f32[1,128], index: 2, kind: input, shape index: {}]   ;;  %s2673_s3 = inlined_call_operand.<no memory space> [shape: f32[1,1], index: 3, kind: input, shape index: {}]   ;;  %s2674_s4 = inlined_call_operand.hbm [shape: bf16[128,256], index: 4, kind: input, shape index: {}]   ;;  %s2675_s5 = inlined_call_operand.vmem [shape: f32[1,256], index: 5, kind: input, shape index: {}]   ;;  %s2676_s6 = inlined_call_operand.hbm [shape: bf16[128,128], index: 6, kind: input, shape index: {}]   ;;  %s2677_s7 = inlined_call_operand.hbm [shape: bf16[128,128], index: 7, kind: input, shape index: {}]   ;;  %s2678_s8 = inlined_call_operand.vmem [shape: f32[1,256], index: 8, kind: input, shape index: {}]   ;;  %s2679_s9 = inlined_call_operand.vmem [shape: f32[256,1], index: 9, kind: output, shape index: {0}]   ;;  %s2680_s10 = inlined_call_operand.hbm [shape: bf16[256,256], index: 10, kind: output, shape index: {1}]  }
   0x1   :  { %2688 = sst [smem:[#allocation24_spill]] %s2670_s0 }
   0x2   :  { %2689 = sst [smem:[#allocation25_spill]] %s2672_s2 }
   0x3   :  { %2690 = sst [smem:[#allocation26_spill]] %s2674_s4 }
   0x4   :  { %2691 = sst [smem:[#allocation27_spill]] %s2676_s6 }
   0x5   :  { %2692 = sst [smem:[#allocation28_spill]] %s2677_s7 }
   0x6   :  { %16 = sst [smem:[#allocation2]] %s2673_s3 }
   0x7   :  { %17 = vsyncpa [#allocation4], 0 }
   0x8   :  { %19 = vsyncpa [#allocation4 + $0x1], 0 }
   0x9   :  { %20 = vsyncpa [#allocation7], 0 }
   0xa   :  { %22 = vsyncpa [#allocation7 + $0x1], 0 }
   0xb   :  { %23 = vsyncpa [#allocation10], 0 }
   0xc   :  { %24 = vsyncpa [#allocation13], 0 }
   0xd   :  { %25 = vsyncpa [#allocation5], 0 }
   0xe   :  { %27 = vsyncpa [#allocation5 + $0x1], 0  ;;  %s2263_s15 = smov 0   ;;  %s2265_s16 = smov 0  }
   0xf   :  { %s2267_s17 = smov 0   ;;  %s2269_s18 = smov 0  }
  0x10 LB: > { %2693 = sst [smem:[#allocation21_spill]] %s2189_s17  ;;  %s2284_s3 = sadd.s32 4294967295, %s2193_s18   ;;  %s2193_s18 = sphi %s2269_s18, %s2710_s18   ;;  %s2189_s17 = sphi %s2267_s17, %s2712_s17   ;;  %s2185_s16 = sphi %s2265_s16, %s2714_s16   ;;  %s2181_s15 = sphi %s2263_s15, %s2713_s15  }
  0x11   : > { %s1560_s19 = sadd.s32 4294967294, %s2193_s18   ;;  %p53_p0 = scmp.ne.s32.totalorder %s2185_s16, %s2181_s15 }
  0x12   : > { %p54_p1 = scmp.eq.s32.totalorder %s2284_s3, 0  ;;  %p276_p2 = scmp.eq.s32.totalorder %s2284_s3, 1 }
  0x13   : > { %p282_p3 = scmp.eq.s32.totalorder %s1560_s19, 1  ;;  %p1561_p5 = scmp.ge.s32.totalorder %s2193_s18, 1 }
  0x14   : > { %p2293_p4 = por %p54_p1, %p53_p0  ;;  %p289_p7 = scmp.lt.s32.totalorder %s2193_s18, 3 }
  0x15   : > { %p2298_p6 = por %p282_p3, %p53_p0  ;;  %s2696_s2 = sld [smem:[#allocation25_spill]] }
  0x16   : > { %p2306_p8 = pnand %p1561_p5, %p289_p7  ;;  %s2195_s26 = smov [#allocation8]  }
  0x17   : > { %s303_s27 = sshll.u32 %s2195_s26, 4  ;;  %s2698_s4 = sld [smem:[#allocation26_spill]]  ;;  %s304_s27 = int_to_ptr.vmem [resolvable:$true] %s303_s27 }
  0x18   : > { %p1854_p10 = pneg %p2306_p8  ;;  %s2196_s12 = smov [#allocation9]  }
  0x19   : > { %s317_s13 = sshll.u32 %s2196_s12, 4  ;;  %s2197_s14 = smov 128   ;;  %s318_s13 = int_to_ptr.vmem [resolvable:$true] %s317_s13 }
  0x1a   : > { %p2318_p11 = pnand %p1854_p10, %p54_p1  ;;  %s2198_s19 = smov 8  }
  0x1b   : > { %s301_s24 = sshll.u32 %s2696_s2, 4  ;;  %s2700_s6 = sld [smem:[#allocation27_spill]]  ;;  %s302_s24 = int_to_ptr.hbm [resolvable:$true] %s301_s24 }
  0x1c   : > { %1857 = dma.hbm_to_vmem [thread:$0]  (!%p2318_p11), %s302_s24, 16, %s304_s27, [#allocation7]  }
  0x1d   : > { %s315_s30 = sshll.u32 %s2698_s4, 4  ;;  %s2199_s28 = smov [#allocation11]   ;;  %s316_s30 = int_to_ptr.hbm [resolvable:$true] %s315_s30 }
  0x1e   : > { %1860 = dma.hbm_to_vmem [thread:$0]  (!%p2318_p11), %s316_s30, 2048, %s318_s13, [#allocation10], %s2197_s14, %s2197_s14, %s2198_s19  }
  0x1f   : > { %s334_s29 = sshll.u32 %s2199_s28, 4  ;;  %s2701_s7 = sld [smem:[#allocation28_spill]]  ;;  %s335_s29 = int_to_ptr.vmem [resolvable:$true] %s334_s29 }
  0x20   : > { %s2681_s30 = smov 64   ;;  %s2683_s13 = smov 4  }
  0x21   : > { %s332_s26 = sshll.u32 %s2700_s6, 4  ;;  %s2202_s14 = smov [#allocation12]   ;;  %s333_s26 = int_to_ptr.hbm [resolvable:$true] %s332_s26 }
  0x22   : > { %1863 = dma.hbm_to_vmem [thread:$0]  (!%p2318_p11), %s333_s26, 1024, %s335_s29, [#allocation10], %s2681_s30, %s2681_s30, %s2683_s13  }
  0x23   : > { %s348_s19 = sshll.u32 %s2202_s14, 4  ;;  %s2343_s22 = sadd.s32 1, %s2193_s18   ;;  %s349_s19 = int_to_ptr.vmem [resolvable:$true] %s348_s19 }
  0x24   : > { %2702 = sst [smem:[#allocation22_spill]] %s2343_s22  ;;  %s40_s23 = sadd.s32 1, %s2189_s17 }
  0x25   : > { %s346_s12 = sshll.u32 %s2701_s7, 4  ;;  %s37_s28 = ssub.s32 %s2193_s18, %s2343_s22  ;;  %s347_s12 = int_to_ptr.hbm [resolvable:$true] %s346_s12 }
  0x26   : > { %1866 = dma.hbm_to_vmem [thread:$0]  (!%p2318_p11), %s347_s12, 1024, %s349_s19, [#allocation13], %s2681_s30, %s2681_s30, %s2683_s13  }
  0x27   : > { %p47_p12 = scmp.ne.s32.totalorder %s2189_s17, %s2185_s16  ;;  %p38_p13 = scmp.eq.s32.totalorder %s37_s28, 0 }
  0x28   : > { %p48_p0 = scmp.eq.s32.totalorder %s2193_s18, 0  ;;  %p1882_p5 = scmp.lt.s32.totalorder %s2193_s18, 2 }
  0x29   : > { %p2353_p3 = por %p276_p2, %p47_p12  ;;  %s365_s11 = sand.u32 1, %s2189_s17  }
  0x2a   : > { %s2359_s29 = scalar_select %p38_p13, %s2189_s17, %s40_s23  }
  0x2b   : > { %p49_p7 = por %p48_p0, %p47_p12  ;;  %s2362_s24 = sshll.u32 %s365_s11, 6 }
  0x2c   : > { %2704 = sst [smem:[#allocation23_spill]] %s2359_s29  ;;  %s1749_s27 = sshll.u32 %s2193_s18, 6 }
  0x2d   : > { %s2705_s0 = sld [smem:[#allocation24_spill]]  ;;  %s369_s28 = scalar_lea.vmem [#allocation3], %s2362_s24 }
  0x2e   : > { %s377_s30 = sshll.u32 %s369_s28, 4  ;;  %p2369_p2 = pnand %p1882_p5, %p49_p7  ;;  %s378_s30 = int_to_ptr.vmem [resolvable:$true] %s377_s30 }
  0x2f   : > { %s396_s6 = scalar_lea.hbm %s2671_s1, %s1749_s27  ;;  %s366_s29 = scalar_lea.sflag [#allocation4], %s365_s11 }
  0x30   : > { %s397_s7 = sshll.u32 %s396_s6, 4  ;;  %p2055_p11 = pneg %p2369_p2  ;;  %s398_s7 = int_to_ptr.hbm [resolvable:$true] %s397_s7 }
  0x33   : > { %s374_s19 = scalar_lea.hbm %s2705_s0, %s1749_s27  ;;  %s2058_s28 = scalar_lea.hbm %s2705_s0, 128 }
  0x34   : > { %s375_s13 = sshll.u32 %s374_s19, 4  ;;  %s376_s13 = int_to_ptr.hbm [resolvable:$true] %s375_s13 }
  0x35   : > { %s2051_s17 = sshra.s32 %s376_s13, 4  ;;  %s2052_s17 = int_to_ptr.hbm [resolvable:$true] %s2051_s17 }
  0x36   : > { %s2053_s12 = scalar_lea.hbm %s2052_s17, 64  ;;  %p2059_p0 = scmp.lt.s32.totalorder %s2052_s17, %s2705_s0 }
  0x37   : > { %p2054_p10 = scmp.ne.s32.totalorder %s2052_s17, %s2053_s12  ;;  %p2060_p5 = scmp.lt.s32.totalorder %s2058_s28, %s2053_s12 }
  0x39   : > { %p2056_p12 = pnand %p2055_p11, %p2054_p10  ;;  %p2061_p7 = por %p2060_p5, %p2059_p0 }
  0x3b   : > { %p2057_p13 = pneg %p2056_p12 }
  0x3d   : > { %p2062_p9 = pnand %p2061_p7, %p2057_p13 }
  0x3f   : > { %2065 = shalt.err (!%p2062_p9)
}
  0x40   : > { %s2707_s6 = smov 4   ;;  %s2708_s11 = smov 64  }
  0x41   : > { %1870 = dma.hbm_to_vmem [thread:$0]  (!%p2369_p2), %s376_s13, 1024, %s378_s30, %s366_s29, %s2708_s11, %s2708_s11, %s2707_s6  }
  0x42   : > { %s391_s27 = scalar_lea.vmem [#allocation6], %s2362_s24  ;;  %s387_s19 = sand.u32 1, %s2193_s18  }
  0x43   : > { %s399_s14 = sshll.u32 %s391_s27, 4  ;;  %s388_s4 = scalar_lea.sflag [#allocation7], %s387_s19  ;;  %s400_s14 = int_to_ptr.vmem [resolvable:$true] %s399_s14 }
  0x44   : > { %s2081_s17 = sshra.s32 %s398_s7, 4  ;;  %s2088_s0 = scalar_lea.hbm %s2671_s1, 128  ;;  %s2082_s17 = int_to_ptr.hbm [resolvable:$true] %s2081_s17 }
  0x45   : > { %s2083_s12 = scalar_lea.hbm %s2082_s17, 64  ;;  %p2089_p13 = scmp.lt.s32.totalorder %s2082_s17, %s2671_s1 }
  0x46   : > { %p2084_p10 = scmp.ne.s32.totalorder %s2082_s17, %s2083_s12  ;;  %p2090_p0 = scmp.lt.s32.totalorder %s2088_s0, %s2083_s12 }
  0x48   : > { %p2086_p9 = pnand %p2084_p10, %p2055_p11  ;;  %p2091_p5 = por %p2090_p0, %p2089_p13 }
  0x4a   : > { %p2087_p12 = pneg %p2086_p9 }
  0x4c   : > { %p2092_p7 = pnand %p2091_p5, %p2087_p12 }
  0x4e   : > { %2095 = shalt.err (!%p2092_p7)
}
  0x4f   : > { %1873 = dma.hbm_to_vmem [thread:$0]  (!%p2369_p2), %s398_s7, 1024, %s400_s14, %s388_s4, %s2708_s11, %s2708_s11, %s2707_s6  }
  0x50   : > { %411 = sbr.rel (%p2306_p8) target bundleno = 536 (0x218), region = 56  ;;  %s2411_s13 = sand.u32 (!%p2306_p8), 1, %s2185_s16  }
  0x51   : > { %s1574_s22 = sshll.u32 (!%p2306_p8), %s2411_s13, 6  ;;  %s414_s0 = scalar_lea.sflag (!%p2306_p8), [#allocation4], %s2411_s13 }
  0x52   : > { %s2415_s29 = scalar_lea.vmem (!%p2306_p8), [#allocation3], %s1574_s22 }
  0x55   : > { %2156 = dma.done.wait (%p2293_p4), %s414_s0, 1024  }
  0x56   : > { %2158 = vsyncadd (%p2293_p4), %s414_s0, 4294966272  ;;  %s423_s2 = sand.u32 1, %s2284_s3   ;;  %s2422_s25 = scalar_lea.vmem [#allocation6], %s1574_s22 }
  0x57   : > { %s424_s7 = scalar_lea.sflag [#allocation7], %s423_s2 }
  0x58   : > { %2160 = dma.done.wait (%p2293_p4), %s424_s7, 1024  }
  0x59   : > { %2162 = vsyncadd (%p2293_p4), %s424_s7, 4294966272 }
  0x5a   : > { %2164 = dma.done.wait (%p54_p1), [#allocation7], 16  }
  0x5b   : > { %2166 = vsyncadd (%p54_p1), [#allocation7], 4294967280 }
  0x5c   : > { %2168 = dma.done.wait (%p54_p1), [#allocation10], 3072  }
  0x5d   : > { %2170 = vsyncadd (%p54_p1), [#allocation10], 4294964224 }
  0x5e   : > { %2172 = dma.done.wait (%p54_p1), [#allocation13], 1024  }
  0x5f   : > { %2174 = vsyncadd (%p54_p1), [#allocation13], 4294966272  ;;  %v1673_v0 = vld [vmem:[#allocation9 + $0x70] sm:$0xf]  ;;  %v1774_v1 = vld [vmem:[#allocation9 + $0x74] sm:$0xf0] }
  0x60   : > { %v1773_v2 = vld [vmem:[#allocation9 + $0x74] sm:$0xf]  ;;  %v1674_v3 = vor.u32 %v1774_v1, %v1673_v0  ;;  %v1675_v4 = vld [vmem:[#allocation9 + $0x78] sm:$0xf0]  ;;  %v1665_v5 = vld [vmem:[#allocation9 + $0x60] sm:$0xf] }
  0x61   : > { %v1772_v6 = vld [vmem:[#allocation9 + $0x64] sm:$0xf0]  ;;  %v1678_v7 = vor.u32 %v1773_v2, %v1675_v4  ;;  %v1771_v8 = vld [vmem:[#allocation9 + $0x64] sm:$0xf]  ;;  %v1667_v9 = vld [vmem:[#allocation9 + $0x68] sm:$0xf0] }
  0x62   : > { %821 = vmatpush.bf16.msra.mxu0 %v1674_v3  ;;  %v1666_v10 = vor.u32 %v1772_v6, %v1665_v5  ;;  %v1670_v11 = vor.u32 %v1771_v8, %v1667_v9  ;;  %v1657_v12 = vld [vmem:[#allocation9 + $0x50] sm:$0xf]  ;;  %v1770_v13 = vld [vmem:[#allocation9 + $0x54] sm:$0xf0]  ;;  %v1769_v14 = vld [vmem:[#allocation9 + $0x54] sm:$0xf] }
  0x63   : > { %870 = vmatpush.bf16.msra.mxu1 %v1678_v7  ;;  %v1659_v15 = vld [vmem:[#allocation9 + $0x58] sm:$0xf0]  ;;  %v1658_v16 = vor.u32 %v1770_v13, %v1657_v12  ;;  %v1649_v18 = vld [vmem:[#allocation9 + $0x40] sm:$0xf]  ;;  %v1768_v19 = vld [vmem:[#allocation9 + $0x44] sm:$0xf0] }
  0x64   : > { %v1662_v17 = vor.u32 %v1769_v14, %v1659_v15  ;;  %v1767_v20 = vld [vmem:[#allocation9 + $0x44] sm:$0xf]  ;;  %v1651_v21 = vld [vmem:[#allocation9 + $0x48] sm:$0xf0]  ;;  %v1650_v22 = vor.u32 %v1768_v19, %v1649_v18  ;;  %v1641_v24 = vld [vmem:[#allocation9 + $0x30] sm:$0xf] }
  0x65   : > { %v1654_v23 = vor.u32 %v1767_v20, %v1651_v21  ;;  %v1766_v25 = vld [vmem:[#allocation9 + $0x34] sm:$0xf0]  ;;  %v1765_v26 = vld [vmem:[#allocation9 + $0x34] sm:$0xf]  ;;  %v1643_v27 = vld [vmem:[#allocation9 + $0x38] sm:$0xf0] }
  0x66   : > { %822 = vmatpush.bf16.msra.mxu0 %v1666_v10  ;;  %v1642_v28 = vor.u32 %v1766_v25, %v1641_v24  ;;  %v1646_v29 = vor.u32 %v1765_v26, %v1643_v27  ;;  %v1633_v30 = vld [vmem:[#allocation9 + $0x20] sm:$0xf]  ;;  %v1764_v31 = vld [vmem:[#allocation9 + $0x24] sm:$0xf0]  ;;  %v1763_v32 = vld [vmem:[#allocation9 + $0x24] sm:$0xf] }
  0x67   : > { %871 = vmatpush.bf16.msra.mxu1 %v1670_v11  ;;  %v1635_v33 = vld [vmem:[#allocation9 + $0x28] sm:$0xf0]  ;;  %v1634_v34 = vor.u32 %v1764_v31, %v1633_v30  ;;  %v1625_v36 = vld [vmem:[#allocation9 + $0x10] sm:$0xf]  ;;  %v1762_v37 = vld [vmem:[#allocation9 + $0x14] sm:$0xf0] }
  0x68   : > { %v1638_v35 = vor.u32 %v1763_v32, %v1635_v33  ;;  %v1761_v38 = vld [vmem:[#allocation9 + $0x14] sm:$0xf]  ;;  %v1627_v39 = vld [vmem:[#allocation9 + $0x18] sm:$0xf0]  ;;  %v1626_v40 = vor.u32 %v1762_v37, %v1625_v36  ;;  %v1617_v42 = vld [vmem:[#allocation9] sm:$0xf] }
  0x69   : > { %v1630_v41 = vor.u32 %v1761_v38, %v1627_v39  ;;  %v1760_v43 = vld [vmem:[#allocation9 + $0x4] sm:$0xf0]  ;;  %v1759_v44 = vld [vmem:[#allocation9 + $0x4] sm:$0xf]  ;;  %v1619_v45 = vld [vmem:[#allocation9 + $0x8] sm:$0xf0] }
  0x6a   : > { %823 = vmatpush.bf16.msra.mxu0 %v1658_v16  ;;  %v1618_v46 = vor.u32 %v1760_v43, %v1617_v42  ;;  %v1622_v47 = vor.u32 %v1759_v44, %v1619_v45  ;;  %v1751_v48 = vld [vmem:[%s2415_s29] sm:$0xff]  ;;  %v1752_v49 = vld [vmem:[%s2415_s29 + $0x8] sm:$0xff]  ;;  %v1753_v50 = vld [vmem:[%s2415_s29 + $0x10] sm:$0xff]  ;;  %s1580_s27 = sshll.u32 %s2411_s13, 7  ;;  %s1581_s19 = sshll.u32 %s2284_s3, 4  ;;  %vm654_vm0 = vcmask 7168  }
  0x6b   : > { %872 = vmatpush.bf16.msra.mxu1 %v1662_v17  ;;  %v1754_v51 = vld [vmem:[%s2415_s29 + $0x18] sm:$0xff]  ;;  %v1755_v52 = vld [vmem:[%s2415_s29 + $0x20] sm:$0xff]  ;;  %v1756_v53 = vld [vmem:[%s2415_s29 + $0x28] sm:$0xff]  ;;  %s2532_s14 = scalar_lea.vmem [#allocation14], %s1580_s27  ;;  %p498_p1 = scmp.lt.s32.totalorder %s1581_s19, 31 }
  0x6c   : > { %v1782_v54 = vld [vmem:[#allocation11 + $0x38] sm:$0xff]  ;;  %v1781_v56 = vld [vmem:[#allocation11 + $0x30] sm:$0xff]  ;;  %v1780_v58 = vld [vmem:[#allocation11 + $0x28] sm:$0xff]  ;;  %s636_s4 = sld [smem:[#allocation2]]  ;;  %s1792_s30 = sshll.u32 %s2284_s3, 7 }
  0x6d   : > { %v1790_v55 = vld [vmem:[#allocation12 + $0x38] sm:$0xff]  ;;  %1111 = vmatpush.bf16.msra.mxu2 %v1782_v54  ;;  %v1789_v57 = vld [vmem:[#allocation12 + $0x30] sm:$0xff]  ;;  %v1788_v59 = vld [vmem:[#allocation12 + $0x28] sm:$0xff]  ;;  %s2716_s19 = smov (!%p498_p1, %s1581_s19), 31  ;;  %s1398_s2 = sshll.u32 %s2532_s14, 4  ;;  %s1399_s2 = int_to_ptr.vmem [resolvable:$true] %s1398_s2 }
  0x6e   : > { %824 = vmatpush.bf16.msra.mxu0 %v1650_v22  ;;  %1256 = vmatpush.bf16.msra.mxu3 %v1790_v55  ;;  %v1757_v60 = vld [vmem:[%s2415_s29 + $0x30] sm:$0xff]  ;;  %v1779_v61 = vld [vmem:[#allocation11 + $0x20] sm:$0xff]  ;;  %v1778_v63 = vld [vmem:[#allocation11 + $0x18] sm:$0xff]  ;;  %s1582_s17 = sshll.u32 %s2716_s19, 3  ;;  %s1381_s3 = scalar_lea.sflag [#allocation5], %s2411_s13 }
  0x6f   : > { %873 = vmatpush.bf16.msra.mxu1 %v1654_v23  ;;  %v1787_v62 = vld [vmem:[#allocation12 + $0x20] sm:$0xff]  ;;  %v1786_v0 = vld [vmem:[#allocation12 + $0x18] sm:$0xff]  ;;  %v1777_v1 = vld [vmem:[#allocation11 + $0x10] sm:$0xff]  ;;  %s2556_s23 = scalar_lea.vmem %s2679_s9, %s1582_s17  ;;  %s2131_s11 = scalar_lea.hbm %s2680_s10, 256 }
  0x70   : > { %v1785_v2 = vld [vmem:[#allocation12 + $0x10] sm:$0xff]  ;;  %v1776_v3 = vld [vmem:[#allocation11 + $0x8] sm:$0xff]  ;;  %v1775_v6 = vld [vmem:[#allocation11] sm:$0xff] }
  0x71   : > { %1112 = vmatpush.bf16.msra.mxu2 %v1781_v56  ;;  %v1784_v4 = vld [vmem:[#allocation12 + $0x8] sm:$0xff]  ;;  %v1758_v5 = vld [vmem:[%s2415_s29 + $0x38] sm:$0xff]  ;;  %v1783_v7 = vld [vmem:[#allocation12] sm:$0xff] }
  0x72   : > { %825 = vmatpush.bf16.msra.mxu0 %v1642_v28  ;;  %1257 = vmatpush.bf16.msra.mxu3 %v1789_v57  ;;  %v687_v8 = vld [vmem:[%s2675_s5] sm:$0x3] }
  0x73   : > { %874 = vmatpush.bf16.msra.mxu1 %v1646_v29  ;;  %v2451_v9 = vperm.slane %v687_v8, 0  ;;  %v2453_v10 = vperm.slane %v687_v8, 1 }
  0x75   : > { %1113 = vmatpush.bf16.msra.mxu2 %v1780_v58 }
  0x76   : > { %826 = vmatpush.bf16.msra.mxu0 %v1634_v34  ;;  %1258 = vmatpush.bf16.msra.mxu3 %v1788_v59 }
  0x77   : > { %875 = vmatpush.bf16.msra.mxu1 %v1638_v35 }
  0x79   : > { %1114 = vmatpush.bf16.msra.mxu2 %v1779_v61 }
  0x7a   : > { %827 = vmatpush.bf16.msra.mxu0 %v1626_v40  ;;  %1259 = vmatpush.bf16.msra.mxu3 %v1787_v62 }
  0x7b   : > { %876 = vmatpush.bf16.msra.mxu1 %v1630_v41 }
  0x7d   : > { %1115 = vmatpush.bf16.msra.mxu2 %v1778_v63 }
  0x7e   : > { %828 = vmatpush.bf16.msra.mxu0 %v1618_v46  ;;  %1260 = vmatpush.bf16.msra.mxu3 %v1786_v0 }
  0x7f   : > { %877 = vmatpush.bf16.msra.mxu1 %v1622_v47 }
  0x81   : > { %829 = vmatmul.bf16.vlgmr.msra.gmra.mxu0 %v1751_v48  ;;  %1116 = vmatpush.bf16.msra.mxu2 %v1777_v1 }
  0x82   : > { %878 = vmatmul.bf16.vlgmr.msra.gmra.mxu1 %v1751_v48  ;;  %1261 = vmatpush.bf16.msra.mxu3 %v1785_v2 }
  0x85   : > { %1117 = vmatpush.bf16.msra.mxu2 %v1776_v3 }
  0x86   : > { %1262 = vmatpush.bf16.msra.mxu3 %v1784_v4 }
  0x89   : > { %1118 = vmatpush.bf16.msra.mxu2 %v1775_v6 }
  0x8a   : > { %1263 = vmatpush.bf16.msra.mxu3 %v1783_v7 }
  0x91   : > { %834 = vmatmul.bf16.gmra.mxu0 %v1752_v49 }
  0x92   : > { %883 = vmatmul.bf16.gmra.mxu1 %v1752_v49 }
  0xa1   : > { %839 = vmatmul.bf16.gmra.mxu0 %v1753_v50 }
  0xa2   : > { %888 = vmatmul.bf16.gmra.mxu1 %v1753_v50 }
  0xb1   : > { %844 = vmatmul.bf16.gmra.mxu0 %v1754_v51 }
  0xb2   : > { %893 = vmatmul.bf16.gmra.mxu1 %v1754_v51 }
  0xc1   : > { %849 = vmatmul.bf16.gmra.mxu0 %v1755_v52 }
  0xc2   : > { %898 = vmatmul.bf16.gmra.mxu1 %v1755_v52 }
  0xd1   : > { %854 = vmatmul.bf16.gmra.mxu0 %v1756_v53 }
  0xd2   : > { %903 = vmatmul.bf16.gmra.mxu1 %v1756_v53 }
  0xe1   : > { %859 = vmatmul.bf16.gmra.mxu0 %v1757_v60 }
  0xe2   : > { %908 = vmatmul.bf16.gmra.mxu1 %v1757_v60 }
  0xf1   : > { %864 = vmatmul.bf16.gmra.mxu0 %v1758_v5 }
  0xf2   : > { %913 = vmatmul.bf16.gmra.mxu1 %v1758_v5 }
  0xfe   : > { %v830_v11 = vpop.f32.mrf.mxu0 }
  0xff   : > { %v831_v12 = vadd.f32 %v830_v11, %v2451_v9  ;;  %v879_v13 = vpop.f32.mrf.mxu1 }
 0x100   : > { %v880_v14 = vadd.f32 %v879_v13, %v2453_v10 }
 0x101   : > { %v919_v15 = vmul.f32 0.1, %v831_v12 }
 0x102   : > { %v920_v16 = vmul.f32 0.1, %v880_v14 }
 0x103   : > { %v951_v18 = vmax.f32 %v831_v12, %v919_v15 }
 0x104   : > { %v952_v19 = vmax.f32 %v880_v14, %v920_v16 }
 0x106   : > { %v832_v17 = vpop.f32.mrf.mxu0  ;;  %v983_v25 = vpack.c.bf16 %v952_v19, %v951_v18 }
 0x107   : > { %v833_v20 = vadd.f32 %v832_v17, %v2451_v9  ;;  %v881_v21 = vpop.f32.mrf.mxu1 }
 0x108   : > { %v882_v22 = vadd.f32 %v881_v21, %v2453_v10  ;;  %v1031_v32 = vunpack.c.l.b16 %v983_v25  ;;  %v1176_v35 = vunpack.c.h.b16 %v983_v25 }
 0x109   : > { %v921_v23 = vmul.f32 0.1, %v833_v20 }
 0x10a   : > { %v922_v24 = vmul.f32 0.1, %v882_v22 }
 0x10b   : > { %v953_v26 = vmax.f32 %v833_v20, %v921_v23 }
 0x10c   : > { %v954_v27 = vmax.f32 %v882_v22, %v922_v24 }
 0x10e   : > { %v984_v28 = vpack.c.bf16 %v954_v27, %v953_v26  ;;  %v835_v29 = vpop.f32.mrf.mxu0 }
 0x10f   : > { %v836_v30 = vadd.f32 %v835_v29, %v2451_v9  ;;  %v884_v31 = vpop.f32.mrf.mxu1 }
 0x110   : > { %v885_v33 = vadd.f32 %v884_v31, %v2453_v10  ;;  %v1032_v34 = vunpack.c.l.b16 %v984_v28  ;;  %v1177_v36 = vunpack.c.h.b16 %v984_v28 }
 0x111   : > { %v923_v39 = vmul.f32 0.1, %v836_v30 }
 0x112   : > { %v1047_v37 = vpack.c.b16 %v1032_v34, %v1031_v32  ;;  %v1192_v38 = vpack.c.b16 %v1177_v36, %v1176_v35  ;;  %v924_v40 = vmul.f32 0.1, %v885_v33 }
 0x113   : > { %v955_v42 = vmax.f32 %v836_v30, %v923_v39 }
 0x114   : > { %1119 = vmatmul.bf16.vlgmr.msra.gmra.mxu2 %v1047_v37  ;;  %1264 = vmatmul.bf16.vlgmr.msra.gmra.mxu3 %v1192_v38  ;;  %v956_v43 = vmax.f32 %v885_v33, %v924_v40 }
 0x116   : > { %v837_v41 = vpop.f32.mrf.mxu0  ;;  %v985_v49 = vpack.c.bf16 %v956_v43, %v955_v42 }
 0x117   : > { %v838_v44 = vadd.f32 %v837_v41, %v2451_v9  ;;  %v886_v45 = vpop.f32.mrf.mxu1 }
 0x118   : > { %v887_v46 = vadd.f32 %v886_v45, %v2453_v10  ;;  %v1033_v56 = vunpack.c.l.b16 %v985_v49  ;;  %v1178_v59 = vunpack.c.h.b16 %v985_v49 }
 0x119   : > { %v925_v47 = vmul.f32 0.1, %v838_v44 }
 0x11a   : > { %v926_v48 = vmul.f32 0.1, %v887_v46 }
 0x11b   : > { %v957_v50 = vmax.f32 %v838_v44, %v925_v47 }
 0x11c   : > { %v958_v51 = vmax.f32 %v887_v46, %v926_v48 }
 0x11e   : > { %v986_v52 = vpack.c.bf16 %v958_v51, %v957_v50  ;;  %v840_v53 = vpop.f32.mrf.mxu0 }
 0x11f   : > { %v841_v54 = vadd.f32 %v840_v53, %v2451_v9  ;;  %v889_v55 = vpop.f32.mrf.mxu1 }
 0x120   : > { %v890_v57 = vadd.f32 %v889_v55, %v2453_v10  ;;  %v1034_v58 = vunpack.c.l.b16 %v986_v52  ;;  %v1179_v60 = vunpack.c.h.b16 %v986_v52 }
 0x121   : > { %v927_v63 = vmul.f32 0.1, %v841_v54 }
 0x122   : > { %v1048_v61 = vpack.c.b16 %v1034_v58, %v1033_v56  ;;  %v1193_v62 = vpack.c.b16 %v1179_v60, %v1178_v59  ;;  %v928_v0 = vmul.f32 0.1, %v890_v57 }
 0x123   : > { %v959_v2 = vmax.f32 %v841_v54, %v927_v63 }
 0x124   : > { %1124 = vmatmul.bf16.gmra.mxu2 %v1048_v61  ;;  %1269 = vmatmul.bf16.gmra.mxu3 %v1193_v62  ;;  %v960_v3 = vmax.f32 %v890_v57, %v928_v0 }
 0x126   : > { %v842_v1 = vpop.f32.mrf.mxu0  ;;  %v987_v11 = vpack.c.bf16 %v960_v3, %v959_v2 }
 0x127   : > { %v843_v4 = vadd.f32 %v842_v1, %v2451_v9  ;;  %v891_v5 = vpop.f32.mrf.mxu1 }
 0x128   : > { %v892_v6 = vadd.f32 %v891_v5, %v2453_v10  ;;  %v1035_v18 = vunpack.c.l.b16 %v987_v11  ;;  %v1180_v21 = vunpack.c.h.b16 %v987_v11  ;;  %v2478_v11 = vld [vmem:[#allocation8] ss:$0 sm:$0xff] }
 0x129   : > { %v929_v7 = vmul.f32 0.1, %v843_v4 }
 0x12a   : > { %v930_v8 = vmul.f32 0.1, %v892_v6 }
 0x12b   : > { %v961_v12 = vmax.f32 %v843_v4, %v929_v7  ;;  %v1794_v7 = vld [vmem:[%s2422_s25] sm:$0xff]  }
 0x12c   : > { %v962_v13 = vmax.f32 %v892_v6, %v930_v8  ;;  %v1795_v8 = vunpack.c.l.bf16 %v1794_v7 }
 0x12e   : > { %v988_v14 = vpack.c.bf16 %v962_v13, %v961_v12  ;;  %v845_v15 = vpop.f32.mrf.mxu0 }
 0x12f   : > { %v846_v16 = vadd.f32 %v845_v15, %v2451_v9  ;;  %v894_v17 = vpop.f32.mrf.mxu1 }
 0x130   : > { %v895_v19 = vadd.f32 %v894_v17, %v2453_v10  ;;  %v1036_v20 = vunpack.c.l.b16 %v988_v14  ;;  %v1181_v22 = vunpack.c.h.b16 %v988_v14 }
 0x131   : > { %v931_v25 = vmul.f32 0.1, %v846_v16 }
 0x132   : > { %v1049_v23 = vpack.c.b16 %v1036_v20, %v1035_v18  ;;  %v1194_v24 = vpack.c.b16 %v1181_v22, %v1180_v21  ;;  %v932_v26 = vmul.f32 0.1, %v895_v19  ;;  %v572_v18 = vadd.f32 %v2478_v11, %v1795_v8  ;;  %v1828_v8 = vld [vmem:[%s2422_s25 + $0x20] sm:$0xff]  }
 0x133   : > { %v963_v28 = vmax.f32 %v846_v16, %v931_v25  ;;  %v504_v16 = vld [vmem:[%s2415_s29] sm:$0xff]  }
 0x134   : > { %1129 = vmatmul.bf16.gmra.mxu2 %v1049_v23  ;;  %1274 = vmatmul.bf16.gmra.mxu3 %v1194_v24  ;;  %v964_v29 = vmax.f32 %v895_v19, %v932_v26  ;;  %v520_v17 = vunpack.c.l.bf16 %v504_v16  ;;  %v1826_v26 = vld [vmem:[%s2422_s25 + $0x10] sm:$0xff]  }
 0x136   : > { %v847_v27 = vpop.f32.mrf.mxu0  ;;  %v989_v35 = vpack.c.bf16 %v964_v29, %v963_v28  ;;  %v588_v19 = vmul.f32 %v572_v18, %v520_v17  ;;  %v1803_v29 = vunpack.c.l.bf16 %v1826_v26 }
 0x137   : > { %v848_v30 = vadd.f32 %v847_v27, %v2451_v9  ;;  %v896_v31 = vpop.f32.mrf.mxu1  ;;  %v1825_v27 = vld [vmem:[%s2422_s25 + $0x8] sm:$0xff]  }
 0x138   : > { %v897_v32 = vadd.f32 %v896_v31, %v2453_v10  ;;  %v1037_v42 = vunpack.c.l.b16 %v989_v35  ;;  %v1182_v45 = vunpack.c.h.b16 %v989_v35  ;;  %604 = vadd.xlane.f32.xlu0 %v588_v19  ;;  %v1796_v31 = vunpack.c.h.bf16 %v1794_v7  ;;  %v506_v35 = vld [vmem:[%s2415_s29 + $0x8] sm:$0xff]   ;;  %v512_v7 = vld [vmem:[%s2415_s29 + $0x20] sm:$0xff]  }
 0x139   : > { %v933_v33 = vmul.f32 0.1, %v848_v30 }
 0x13a   : > { %v934_v34 = vmul.f32 0.1, %v897_v32 }
 0x13b   : > { %v965_v36 = vmax.f32 %v848_v30, %v933_v33  ;;  %v1799_v30 = vunpack.c.l.bf16 %v1825_v27 }
 0x13c   : > { %v966_v37 = vmax.f32 %v897_v32, %v934_v34  ;;  %v508_v34 = vld [vmem:[%s2415_s29 + $0x10] sm:$0xff]  }
 0x13e   : > { %v990_v38 = vpack.c.bf16 %v966_v37, %v965_v36  ;;  %v850_v39 = vpop.f32.mrf.mxu0  ;;  %v524_v37 = vunpack.c.l.bf16 %v508_v34 }
 0x13f   : > { %v851_v40 = vadd.f32 %v850_v39, %v2451_v9  ;;  %v899_v41 = vpop.f32.mrf.mxu1  ;;  %v522_v39 = vunpack.c.l.bf16 %v506_v35 }
 0x140   : > { %v900_v43 = vadd.f32 %v899_v41, %v2453_v10  ;;  %v1038_v44 = vunpack.c.l.b16 %v990_v38  ;;  %v1183_v46 = vunpack.c.h.b16 %v990_v38  ;;  %v576_v38 = vadd.f32 %v2478_v11, %v1803_v29  ;;  %v1829_v29 = vld [vmem:[%s2422_s25 + $0x28] sm:$0xff]  }
 0x141   : > { %v935_v49 = vmul.f32 0.1, %v851_v40  ;;  %v574_v41 = vadd.f32 %v2478_v11, %v1799_v30 }
 0x142   : > { %v1050_v47 = vpack.c.b16 %v1038_v44, %v1037_v42  ;;  %v1195_v48 = vpack.c.b16 %v1183_v46, %v1182_v45  ;;  %v936_v50 = vmul.f32 0.1, %v900_v43  ;;  %v521_v42 = vunpack.c.h.bf16 %v504_v16 }
 0x143   : > { %v967_v52 = vmax.f32 %v851_v40, %v935_v49  ;;  %v592_v44 = vmul.f32 %v576_v38, %v524_v37 }
 0x144   : > { %1134 = vmatmul.bf16.gmra.mxu2 %v1050_v47  ;;  %1279 = vmatmul.bf16.gmra.mxu3 %v1195_v48  ;;  %v968_v53 = vmax.f32 %v900_v43, %v936_v50  ;;  %v573_v43 = vadd.f32 %v2478_v11, %v1796_v31  ;;  %v590_v47 = vmul.f32 %v574_v41, %v522_v39  ;;  %v514_v41 = vld [vmem:[%s2415_s29 + $0x28] sm:$0xf] }
 0x145   : > { %612 = vadd.xlane.f32.xlu2 %v592_v44 }
 0x146   : > { %v852_v51 = vpop.f32.mrf.mxu0  ;;  %v991_v59 = vpack.c.bf16 %v968_v53, %v967_v52  ;;  %v589_v48 = vmul.f32 %v573_v43, %v521_v42  ;;  %608 = vadd.xlane.f32.xlu1 %v590_v47  ;;  %v1815_v42 = vunpack.c.l.bf16 %v1829_v29 }
 0x147   : > { %v853_v54 = vadd.f32 %v852_v51, %v2451_v9  ;;  %v901_v55 = vpop.f32.mrf.mxu1 }
 0x148   : > { %v902_v56 = vadd.f32 %v901_v55, %v2453_v10  ;;  %v1039_v2 = vunpack.c.l.b16 %v991_v59  ;;  %v1184_v5 = vunpack.c.h.b16 %v991_v59  ;;  %606 = vadd.xlane.f32.xlu0 %v589_v48  ;;  %v1800_v59 = vunpack.c.h.bf16 %v1825_v27 }
 0x149   : > { %v937_v57 = vmul.f32 0.1, %v853_v54 }
 0x14a   : > { %v938_v58 = vmul.f32 0.1, %v902_v56 }
 0x14b   : > { %v969_v60 = vmax.f32 %v853_v54, %v937_v57 }
 0x14c   : > { %v970_v61 = vmax.f32 %v902_v56, %v938_v58  ;;  %v1827_v56 = vld [vmem:[%s2422_s25 + $0x18] sm:$0xff]   ;;  %v1804_v58 = vunpack.c.h.bf16 %v1826_v26 }
 0x14d   : > { %v1808_v19 = vunpack.c.h.bf16 %v1827_v56 }
 0x14e   : > { %v992_v62 = vpack.c.bf16 %v970_v61, %v969_v60  ;;  %v855_v63 = vpop.f32.mrf.mxu0  ;;  %v1807_v60 = vunpack.c.l.bf16 %v1827_v56  ;;  %v1830_v56 = vld [vmem:[%s2422_s25 + $0x30] sm:$0xff]  }
 0x14f   : > { %v856_v0 = vadd.f32 %v855_v63, %v2451_v9  ;;  %v904_v1 = vpop.f32.mrf.mxu1  ;;  %v579_v27 = vadd.f32 %v2478_v11, %v1808_v19  ;;  %v518_v19 = vld [vmem:[%s2415_s29 + $0x38] sm:$0xff]  }
 0x150   : > { %v905_v3 = vadd.f32 %v904_v1, %v2453_v10  ;;  %v1040_v4 = vunpack.c.l.b16 %v992_v62  ;;  %v1185_v6 = vunpack.c.h.b16 %v992_v62  ;;  %v525_v1 = vunpack.c.h.bf16 %v508_v34 }
 0x151   : > { %v939_v12 = vmul.f32 0.1, %v856_v0 }
 0x152   : > { %v940_v13 = vmul.f32 0.1, %v905_v3  ;;  %v1051_v14 = vpack.c.b16 %v1040_v4, %v1039_v2  ;;  %v1196_v15 = vpack.c.b16 %v1185_v6, %v1184_v5  ;;  %v577_v2 = vadd.f32 %v2478_v11, %v1804_v58 }
 0x153   : > { %v971_v20 = vmax.f32 %v856_v0, %v939_v12  ;;  %v510_v0 = vld [vmem:[%s2415_s29 + $0x18] sm:$0xff]   ;;  %v575_v4 = vadd.f32 %v2478_v11, %v1800_v59  ;;  %v578_v6 = vadd.f32 %v2478_v11, %v1807_v60 }
 0x154   : > { %1139 = vmatmul.bf16.gmra.mxu2 %v1051_v14  ;;  %1284 = vmatmul.bf16.gmra.mxu3 %v1196_v15  ;;  %v972_v21 = vmax.f32 %v905_v3, %v940_v13  ;;  %v523_v3 = vunpack.c.h.bf16 %v506_v35  ;;  %v526_v5 = vunpack.c.l.bf16 %v510_v0  ;;  %v593_v13 = vmul.f32 %v577_v2, %v525_v1 }
 0x155   : > { %v1811_v14 = vunpack.c.l.bf16 %v1828_v8  ;;  %v527_v26 = vunpack.c.h.bf16 %v510_v0 }
 0x156   : > { %v857_v22 = vpop.f32.mrf.mxu0  ;;  %v993_v32 = vpack.c.bf16 %v972_v21, %v971_v20  ;;  %v591_v17 = vmul.f32 %v575_v4, %v523_v3  ;;  %v594_v18 = vmul.f32 %v578_v6, %v526_v5  ;;  %614 = vadd.xlane.f32.xlu2 %v593_v13 }
 0x157   : > { %v858_v23 = vadd.f32 %v857_v22, %v2451_v9  ;;  %v906_v24 = vpop.f32.mrf.mxu1  ;;  %v528_v22 = vunpack.c.l.bf16 %v512_v7  ;;  %v595_v38 = vmul.f32 %v579_v27, %v527_v26 }
 0x158   : > { %v907_v25 = vadd.f32 %v906_v24, %v2453_v10  ;;  %v1041_v51 = vunpack.c.l.b16 %v993_v32  ;;  %v1186_v54 = vunpack.c.h.b16 %v993_v32  ;;  %v1812_v24 = vunpack.c.h.bf16 %v1828_v8  ;;  %610 = vadd.xlane.f32.xlu1 %v591_v17  ;;  %616 = vadd.xlane.f32.xlu0 %v594_v18 }
 0x159   : > { %v941_v28 = vmul.f32 0.1, %v858_v23 }
 0x15a   : > { %v942_v33 = vmul.f32 0.1, %v907_v25  ;;  %v581_v31 = vadd.f32 %v2478_v11, %v1812_v24 }
 0x15b   : > { %v973_v36 = vmax.f32 %v858_v23, %v941_v28  ;;  %v580_v23 = vadd.f32 %v2478_v11, %v1811_v14  ;;  %v529_v28 = vunpack.c.h.bf16 %v512_v7 }
 0x15c   : > { %v974_v40 = vmax.f32 %v907_v25, %v942_v33 }
 0x15d   : > { %v596_v35 = vmul.f32 %v580_v23, %v528_v22  ;;  %v597_v39 = vmul.f32 %v581_v31, %v529_v28  ;;  %v534_v22 = vunpack.c.l.bf16 %v518_v19 }
 0x15e   : > { %v994_v45 = vpack.c.bf16 %v974_v40, %v973_v36  ;;  %v860_v46 = vpop.f32.mrf.mxu0  ;;  %v1816_v36 = vunpack.c.h.bf16 %v1829_v29  ;;  %v515_v40 = vld [vmem:[%s2415_s29 + $0x2c] sm:$0xff]  }
 0x15f   : > { %v861_v49 = vadd.f32 %v860_v46, %v2451_v9  ;;  %v909_v50 = vpop.f32.mrf.mxu1  ;;  %620 = vadd.xlane.f32.xlu2 %v596_v35 }
 0x160   : > { %v910_v52 = vadd.f32 %v909_v50, %v2453_v10  ;;  %v1042_v53 = vunpack.c.l.b16 %v994_v45  ;;  %v1187_v55 = vunpack.c.h.b16 %v994_v45  ;;  %v583_v50 = vadd.f32 %v2478_v11, %v1816_v36  ;;  %618 = vadd.xlane.f32.xlu1 %v595_v38  ;;  %622 = vadd.xlane.f32.xlu0 %v597_v39 }
 0x161   : > { %v943_v57 = vmul.f32 0.1, %v861_v49 }
 0x162   : > { %v944_v61 = vmul.f32 0.1, %v910_v52  ;;  %v1052_v62 = vpack.c.b16 %v1042_v53, %v1041_v51  ;;  %v1197_v63 = vpack.c.b16 %v1187_v55, %v1186_v54  ;;  %v530_v51 = vunpack.c.l.bf16 %v514_v41 }
 0x163   : > { %v975_v12 = vmax.f32 %v861_v49, %v943_v57  ;;  %v531_v49 = vunpack.c.l.bf16 %v515_v40  ;;  %v582_v55 = vadd.f32 %v2478_v11, %v1815_v42  ;;  %v1819_v57 = vunpack.c.l.bf16 %v1830_v56 }
 0x164   : > { %1144 = vmatmul.bf16.gmra.mxu2 %v1052_v62  ;;  %1289 = vmatmul.bf16.gmra.mxu3 %v1197_v63  ;;  %v976_v15 = vmax.f32 %v910_v52, %v944_v61  ;;  %v532_v63 = vunpack.c.h.bf16 %v515_v40 }
 0x165   : > { %v599_v62 = vmul.f32 %v583_v50, %v531_v49  ;;  %v584_v0 = vadd.f32 %v2478_v11, %v1819_v57  ;;  %v598_v1 = vmul.f32 %v582_v55, %v530_v51 }
 0x166   : > { %v862_v16 = vpop.f32.mrf.mxu0  ;;  %v995_v32 = vpack.c.bf16 %v976_v15, %v975_v12  ;;  %v1831_v12 = vld [vmem:[%s2422_s25 + $0x38] sm:$0xff]   ;;  %v1820_v15 = vunpack.c.h.bf16 %v1830_v56 }
 0x167   : > { %v863_v20 = vadd.f32 %v862_v16, %v2451_v9  ;;  %v911_v21 = vpop.f32.mrf.mxu1  ;;  %v600_v2 = vmul.f32 %v584_v0, %v532_v63  ;;  %626 = vadd.xlane.f32.xlu2 %v599_v62  ;;  %v1823_v14 = vunpack.c.l.bf16 %v1831_v12  ;;  %v1824_v16 = vunpack.c.h.bf16 %v1831_v12 }
 0x168   : > { %v912_v25 = vadd.f32 %v911_v21, %v2453_v10  ;;  %v1043_v45 = vunpack.c.l.b16 %v995_v32  ;;  %v1188_v46 = vunpack.c.h.b16 %v995_v32  ;;  %624 = vadd.xlane.f32.xlu1 %v598_v1 }
 0x169   : > { %v945_v30 = vmul.f32 0.1, %v863_v20  ;;  %628 = vadd.xlane.f32.xlu0 %v600_v2  ;;  %v586_v23 = vadd.f32 %v2478_v11, %v1823_v14  ;;  %v587_v26 = vadd.f32 %v2478_v11, %v1824_v16 }
 0x16a   : > { %v946_v33 = vmul.f32 0.1, %v912_v25 }
 0x16b   : > { %v977_v34 = vmax.f32 %v863_v20, %v945_v30  ;;  %v517_v20 = vld [vmem:[%s2415_s29 + $0x34] sm:$0xf]  ;;  %v602_v27 = vmul.f32 %v586_v23, %v534_v22  ;;  %s1397_s29 = scalar_lea.hbm %s2680_s10, %s1792_s30 }
 0x16c   : > { %v978_v37 = vmax.f32 %v912_v25, %v946_v33  ;;  %v585_v25 = vadd.f32 %v2478_v11, %v1820_v15  ;;  %v1305_v11 = vld [vmem:[%s2678_s8] sm:$0x3]  ;;  %s1400_s7 = sshll.u32 %s1397_s29, 4  ;;  %s1401_s7 = int_to_ptr.hbm [resolvable:$true] %s1400_s7 }
 0x16d   : > { %v2527_v38 = vperm.slane %v1305_v11, 1  ;;  %s2125_s25 = sshra.s32 %s1401_s7, 4  ;;  %s2126_s25 = int_to_ptr.hbm [resolvable:$true] %s2125_s25 }
 0x16e   : > { %v996_v43 = vpack.c.bf16 %v978_v37, %v977_v34  ;;  %v865_v44 = vpop.f32.mrf.mxu0  ;;  %v2525_v37 = vperm.slane %v1305_v11, 0  ;;  %s2127_s20 = scalar_lea.hbm %s2126_s25, 128  ;;  %p2132_p11 = scmp.lt.s32.totalorder %s2126_s25, %s2680_s10 }
 0x16f   : > { %v866_v47 = vadd.f32 %v865_v44, %v2451_v9  ;;  %v914_v48 = vpop.f32.mrf.mxu1  ;;  %632 = vadd.xlane.f32.xlu2 %v602_v27  ;;  %p2128_p4 = scmp.ne.s32.totalorder %s2126_s25, %s2127_s20  ;;  %p2133_p10 = scmp.lt.s32.totalorder %s2131_s11, %s2127_s20 }
 0x170   : > { %v915_v52 = vadd.f32 %v914_v48, %v2453_v10  ;;  %v1044_v53 = vunpack.c.l.b16 %v996_v43  ;;  %v1189_v54 = vunpack.c.h.b16 %v996_v43 }
 0x171   : > { %v947_v58 = vmul.f32 0.1, %v866_v47  ;;  %p2129_p8 = pnand %p2128_p4, %p2353_p3  ;;  %p2134_p9 = por %p2133_p10, %p2132_p11 }
 0x172   : > { %v948_v59 = vmul.f32 0.1, %v915_v52  ;;  %v1053_v60 = vpack.c.b16 %v1044_v53, %v1043_v45  ;;  %v1198_v61 = vpack.c.b16 %v1189_v54, %v1188_v46 }
 0x173   : > { %v979_v3 = vmax.f32 %v866_v47, %v947_v58  ;;  %p2130_p2 = pneg %p2129_p8 }
 0x174   : > { %1149 = vmatmul.bf16.gmra.mxu2 %v1053_v60  ;;  %1294 = vmatmul.bf16.gmra.mxu3 %v1198_v61  ;;  %v980_v4 = vmax.f32 %v915_v52, %v948_v59 }
 0x175   : > { %p2135_p12 = pnand %p2134_p9, %p2130_p2 }
 0x176   : > { %v867_v5 = vpop.f32.mrf.mxu0  ;;  %v997_v17 = vpack.c.bf16 %v980_v4, %v979_v3 }
 0x177   : > { %v868_v6 = vadd.f32 %v867_v5, %v2451_v9  ;;  %v916_v7 = vpop.f32.mrf.mxu1  ;;  %v533_v9 = vunpack.c.l.bf16 %v517_v20 }
 0x178   : > { %v917_v8 = vadd.f32 %v916_v7, %v2453_v10  ;;  %v535_v10 = vunpack.c.h.bf16 %v518_v19  ;;  %v1045_v31 = vunpack.c.l.b16 %v997_v17  ;;  %v1190_v33 = vunpack.c.h.b16 %v997_v17 }
 0x179   : > { %v949_v13 = vmul.f32 0.1, %v868_v6  ;;  %v601_v29 = vmul.f32 %v585_v25, %v533_v9 }
 0x17a   : > { %v950_v18 = vmul.f32 0.1, %v917_v8  ;;  %v603_v30 = vmul.f32 %v587_v26, %v535_v10 }
 0x17b   : > { %v981_v21 = vmax.f32 %v868_v6, %v949_v13  ;;  %630 = vadd.xlane.f32.xlu1 %v601_v29  ;;  %v2558_v13 = vstv %s636_s4 }
 0x17c   : > { %v982_v24 = vmax.f32 %v917_v8, %v950_v18  ;;  %634 = vadd.xlane.f32.xlu0 %v603_v30 }
 0x17e   : > { %v998_v28 = vpack.c.bf16 %v982_v24, %v981_v21 }
 0x180   : > { %v1046_v32 = vunpack.c.l.b16 %v998_v28  ;;  %v1191_v34 = vunpack.c.h.b16 %v998_v28 }
 0x182   : > { %v1054_v35 = vpack.c.b16 %v1046_v32, %v1045_v31  ;;  %v1199_v36 = vpack.c.b16 %v1191_v34, %v1190_v33 }
 0x184   : > { %1154 = vmatmul.bf16.gmra.mxu2 %v1054_v35  ;;  %1299 = vmatmul.bf16.gmra.mxu3 %v1199_v36 }
 0x197   : > { %v1120_v39 = vpop.f32.mrf.mxu2  ;;  %v1265_v40 = vpop.f32.mrf.mxu3 }
 0x198   : > { %v1311_v41 = vadd.f32 %v2525_v37, %v1120_v39  ;;  %v1312_v42 = vadd.f32 %v2527_v38, %v1265_v40 }
 0x19a   : > { %v1343_v43 = vpack.c.bf16 %v1312_v42, %v1311_v41 }
 0x19c   : > { %1359 = vst [vmem:[%s2532_s14] sm:$0xff] %v1343_v43 }
 0x19f   : > { %v1122_v44 = vpop.f32.mrf.mxu2  ;;  %v1267_v45 = vpop.f32.mrf.mxu3 }
 0x1a0   : > { %v1313_v46 = vadd.f32 %v2525_v37, %v1122_v44  ;;  %v1314_v47 = vadd.f32 %v2527_v38, %v1267_v45 }
 0x1a2   : > { %v1344_v48 = vpack.c.bf16 %v1314_v47, %v1313_v46 }
 0x1a4   : > { %1360 = vst [vmem:[%s2532_s14 + $0x8] sm:$0xff] %v1344_v48 }
 0x1a7   : > { %v1125_v49 = vpop.f32.mrf.mxu2  ;;  %v1270_v50 = vpop.f32.mrf.mxu3 }
 0x1a8   : > { %v1315_v51 = vadd.f32 %v2525_v37, %v1125_v49  ;;  %v1316_v52 = vadd.f32 %v2527_v38, %v1270_v50 }
 0x1aa   : > { %v1345_v53 = vpack.c.bf16 %v1316_v52, %v1315_v51 }
 0x1ab   : > { %v605_v14 = vpop.xlane.xlu0 %604 }
 0x1ac   : > { %1361 = vst [vmem:[%s2532_s14 + $0x10] sm:$0xff] %v1345_v53  ;;  %v638_v15 = vadd.f32 %v2558_v13, %v605_v14 }
 0x1ae   : > { %655 = vst.msk [vmem:[%s2556_s23] sm:$0xff] %vm654_vm0, %v638_v15 }
 0x1af   : > { %v1127_v54 = vpop.f32.mrf.mxu2  ;;  %v1272_v55 = vpop.f32.mrf.mxu3 }
 0x1b0   : > { %v1317_v56 = vadd.f32 %v2525_v37, %v1127_v54  ;;  %v1318_v57 = vadd.f32 %v2527_v38, %v1272_v55 }
 0x1b2   : > { %v1346_v58 = vpack.c.bf16 %v1318_v57, %v1317_v56 }
 0x1b4   : > { %1362 = vst [vmem:[%s2532_s14 + $0x18] sm:$0xff] %v1346_v58 }
 0x1b7   : > { %v1130_v59 = vpop.f32.mrf.mxu2  ;;  %v1275_v60 = vpop.f32.mrf.mxu3 }
 0x1b8   : > { %v1319_v61 = vadd.f32 %v2525_v37, %v1130_v59  ;;  %v1320_v62 = vadd.f32 %v2527_v38, %v1275_v60  ;;  %v613_v21 = vpop.xlane.xlu2 %612 }
 0x1b9   : > { %v642_v22 = vadd.f32 %v2558_v13, %v613_v21  ;;  %v609_v23 = vpop.xlane.xlu1 %608 }
 0x1ba   : > { %v1347_v63 = vpack.c.bf16 %v1320_v62, %v1319_v61  ;;  %v640_v24 = vadd.f32 %v2558_v13, %v609_v23 }
 0x1bb   : > { %v607_v9 = vpop.xlane.xlu0 %606  ;;  %659 = vst.msk [vmem:[%s2556_s23 + $0x20] sm:$0xff] %vm654_vm0, %v642_v22 }
 0x1bc   : > { %1363 = vst [vmem:[%s2532_s14 + $0x20] sm:$0xff] %v1347_v63  ;;  %v639_v25 = vadd.f32 %v2558_v13, %v607_v9 }
 0x1bd   : > { %657 = vst.msk [vmem:[%s2556_s23 + $0x10] sm:$0xff] %vm654_vm0, %v640_v24 }
 0x1be   : > { %656 = vst.msk [vmem:[%s2556_s23 + $0x8] sm:$0xff] %vm654_vm0, %v639_v25 }
 0x1bf   : > { %v1132_v0 = vpop.f32.mrf.mxu2  ;;  %v1277_v1 = vpop.f32.mrf.mxu3 }
 0x1c0   : > { %v1321_v2 = vadd.f32 %v2525_v37, %v1132_v0  ;;  %v1322_v3 = vadd.f32 %v2527_v38, %v1277_v1 }
 0x1c2   : > { %v1348_v4 = vpack.c.bf16 %v1322_v3, %v1321_v2 }
 0x1c4   : > { %1364 = vst [vmem:[%s2532_s14 + $0x28] sm:$0xff] %v1348_v4 }
 0x1c7   : > { %v1135_v5 = vpop.f32.mrf.mxu2  ;;  %v1280_v6 = vpop.f32.mrf.mxu3 }
 0x1c8   : > { %v1323_v7 = vadd.f32 %v2525_v37, %v1135_v5  ;;  %v1324_v8 = vadd.f32 %v2527_v38, %v1280_v6 }
 0x1c9   : > { %v615_v30 = vpop.xlane.xlu2 %614 }
 0x1ca   : > { %v1349_v12 = vpack.c.bf16 %v1324_v8, %v1323_v7  ;;  %v643_v31 = vadd.f32 %v2558_v13, %v615_v30 }
 0x1cb   : > { %v611_v32 = vpop.xlane.xlu1 %610  ;;  %v617_v33 = vpop.xlane.xlu0 %616 }
 0x1cc   : > { %1365 = vst [vmem:[%s2532_s14 + $0x30] sm:$0xff] %v1349_v12  ;;  %v641_v34 = vadd.f32 %v2558_v13, %v611_v32  ;;  %v644_v35 = vadd.f32 %v2558_v13, %v617_v33 }
 0x1cd   : > { %660 = vst.msk [vmem:[%s2556_s23 + $0x28] sm:$0xff] %vm654_vm0, %v643_v31 }
 0x1ce   : > { %658 = vst.msk [vmem:[%s2556_s23 + $0x18] sm:$0xff] %vm654_vm0, %v641_v34 }
 0x1cf   : > { %v1137_v16 = vpop.f32.mrf.mxu2  ;;  %v1282_v17 = vpop.f32.mrf.mxu3  ;;  %661 = vst.msk [vmem:[%s2556_s23 + $0x30] sm:$0xff] %vm654_vm0, %v644_v35 }
 0x1d0   : > { %v1325_v18 = vadd.f32 %v2525_v37, %v1137_v16  ;;  %v1326_v19 = vadd.f32 %v2527_v38, %v1282_v17 }
 0x1d2   : > { %v1350_v20 = vpack.c.bf16 %v1326_v19, %v1325_v18  ;;  %v621_v42 = vpop.xlane.xlu2 %620 }
 0x1d3   : > { %v646_v43 = vadd.f32 %v2558_v13, %v621_v42  ;;  %v619_v44 = vpop.xlane.xlu1 %618  ;;  %v623_v45 = vpop.xlane.xlu0 %622 }
 0x1d4   : > { %1366 = vst [vmem:[%s2532_s14 + $0x38] sm:$0xff] %v1350_v20  ;;  %v645_v46 = vadd.f32 %v2558_v13, %v619_v44  ;;  %v647_v47 = vadd.f32 %v2558_v13, %v623_v45 }
 0x1d5   : > { %663 = vst.msk [vmem:[%s2556_s23 + $0x40] sm:$0xff] %vm654_vm0, %v646_v43 }
 0x1d6   : > { %662 = vst.msk [vmem:[%s2556_s23 + $0x38] sm:$0xff] %vm654_vm0, %v645_v46 }
 0x1d7   : > { %v1140_v10 = vpop.f32.mrf.mxu2  ;;  %v1285_v26 = vpop.f32.mrf.mxu3  ;;  %664 = vst.msk [vmem:[%s2556_s23 + $0x48] sm:$0xff] %vm654_vm0, %v647_v47 }
 0x1d8   : > { %v1327_v27 = vadd.f32 %v2525_v37, %v1140_v10  ;;  %v1328_v28 = vadd.f32 %v2527_v38, %v1285_v26 }
 0x1da   : > { %v1351_v29 = vpack.c.bf16 %v1328_v28, %v1327_v27  ;;  %v627_v53 = vpop.xlane.xlu2 %626 }
 0x1db   : > { %v649_v54 = vadd.f32 %v2558_v13, %v627_v53  ;;  %v625_v55 = vpop.xlane.xlu1 %624 }
 0x1dc   : > { %1367 = vst [vmem:[%s2532_s14 + $0x40] sm:$0xff] %v1351_v29  ;;  %v629_v56 = vpop.xlane.xlu0 %628  ;;  %v648_v57 = vadd.f32 %v2558_v13, %v625_v55 }
 0x1dd   : > { %v650_v58 = vadd.f32 %v2558_v13, %v629_v56  ;;  %666 = vst.msk [vmem:[%s2556_s23 + $0x58] sm:$0xff] %vm654_vm0, %v649_v54 }
 0x1de   : > { %665 = vst.msk [vmem:[%s2556_s23 + $0x50] sm:$0xff] %vm654_vm0, %v648_v57 }
 0x1df   : > { %v1142_v36 = vpop.f32.mrf.mxu2  ;;  %v1287_v11 = vpop.f32.mrf.mxu3  ;;  %667 = vst.msk [vmem:[%s2556_s23 + $0x60] sm:$0xff] %vm654_vm0, %v650_v58 }
 0x1e0   : > { %v1329_v39 = vadd.f32 %v2525_v37, %v1142_v36  ;;  %v1330_v40 = vadd.f32 %v2527_v38, %v1287_v11 }
 0x1e2   : > { %v1352_v41 = vpack.c.bf16 %v1330_v40, %v1329_v39  ;;  %v633_v0 = vpop.xlane.xlu2 %632 }
 0x1e3   : > { %v652_v1 = vadd.f32 %v2558_v13, %v633_v0 }
 0x1e4   : > { %1368 = vst [vmem:[%s2532_s14 + $0x48] sm:$0xff] %v1352_v41 }
 0x1e5   : > { %669 = vst.msk [vmem:[%s2556_s23 + $0x70] sm:$0xff] %vm654_vm0, %v652_v1 }
 0x1e7   : > { %v1145_v48 = vpop.f32.mrf.mxu2  ;;  %v1290_v49 = vpop.f32.mrf.mxu3 }
 0x1e8   : > { %v1331_v50 = vadd.f32 %v2525_v37, %v1145_v48  ;;  %v1332_v51 = vadd.f32 %v2527_v38, %v1290_v49 }
 0x1ea   : > { %v1353_v52 = vpack.c.bf16 %v1332_v51, %v1331_v50 }
 0x1ec   : > { %1369 = vst [vmem:[%s2532_s14 + $0x50] sm:$0xff] %v1353_v52 }
 0x1ee   : > { %v631_v2 = vpop.xlane.xlu1 %630 }
 0x1ef   : > { %v1147_v59 = vpop.f32.mrf.mxu2  ;;  %v1292_v60 = vpop.f32.mrf.mxu3  ;;  %v651_v4 = vadd.f32 %v2558_v13, %v631_v2 }
 0x1f0   : > { %v1333_v61 = vadd.f32 %v2525_v37, %v1147_v59  ;;  %v1334_v62 = vadd.f32 %v2527_v38, %v1292_v60  ;;  %v635_v3 = vpop.xlane.xlu0 %634 }
 0x1f1   : > { %v653_v5 = vadd.f32 %v2558_v13, %v635_v3  ;;  %668 = vst.msk [vmem:[%s2556_s23 + $0x68] sm:$0xff] %vm654_vm0, %v651_v4 }
 0x1f2   : > { %v1354_v63 = vpack.c.bf16 %v1334_v62, %v1333_v61 }
 0x1f3   : > { %670 = vst.msk [vmem:[%s2556_s23 + $0x78] sm:$0xff] %vm654_vm0, %v653_v5 }
 0x1f4   : > { %1370 = vst [vmem:[%s2532_s14 + $0x58] sm:$0xff] %v1354_v63 }
 0x1f7   : > { %v1150_v6 = vpop.f32.mrf.mxu2  ;;  %v1295_v7 = vpop.f32.mrf.mxu3 }
 0x1f8   : > { %v1335_v8 = vadd.f32 %v2525_v37, %v1150_v6  ;;  %v1336_v12 = vadd.f32 %v2527_v38, %v1295_v7 }
 0x1fa   : > { %v1355_v14 = vpack.c.bf16 %v1336_v12, %v1335_v8 }
 0x1fc   : > { %1371 = vst [vmem:[%s2532_s14 + $0x60] sm:$0xff] %v1355_v14 }
 0x1ff   : > { %v1152_v15 = vpop.f32.mrf.mxu2  ;;  %v1297_v16 = vpop.f32.mrf.mxu3 }
 0x200   : > { %v1337_v13 = vadd.f32 %v2525_v37, %v1152_v15  ;;  %v1338_v17 = vadd.f32 %v2527_v38, %v1297_v16 }
 0x202   : > { %v1356_v18 = vpack.c.bf16 %v1338_v17, %v1337_v13 }
 0x204   : > { %1372 = vst [vmem:[%s2532_s14 + $0x68] sm:$0xff] %v1356_v18 }
 0x207   : > { %v1155_v19 = vpop.f32.mrf.mxu2  ;;  %v1300_v20 = vpop.f32.mrf.mxu3 }
 0x208   : > { %v1339_v21 = vadd.f32 %v2525_v37, %v1155_v19  ;;  %v1340_v22 = vadd.f32 %v2527_v38, %v1300_v20 }
 0x20a   : > { %v1357_v23 = vpack.c.bf16 %v1340_v22, %v1339_v21 }
 0x20c   : > { %1373 = vst [vmem:[%s2532_s14 + $0x70] sm:$0xff] %v1357_v23 }
 0x20f   : > { %v1157_v9 = vpop.f32.mrf.mxu2  ;;  %v1302_v24 = vpop.f32.mrf.mxu3 }
 0x210   : > { %v1341_v25 = vadd.f32 %v2525_v37, %v1157_v9  ;;  %v1342_v10 = vadd.f32 %v2527_v38, %v1302_v24 }
 0x212   : > { %v1358_v26 = vpack.c.bf16 %v1342_v10, %v1341_v25 }
 0x214   : > { %1374 = vst [vmem:[%s2532_s14 + $0x78] sm:$0xff] %v1358_v26 }
 0x215   : > { %2138 = shalt.err (!%p2135_p12)
}
 0x216   : > { %s2203_s13 = smov 128   ;;  %s2204_s14 = smov 8  }
 0x217   : > { %1852 = dma.vmem_to_hbm [thread:$0]  (%p2353_p3), %s1399_s2, 2048, %s1401_s7, %s1381_s3, %s2203_s13, %s2203_s13, %s2204_s14  }
 0x218 PF: > { %s1423_s4 = sand.u32 1, %s2181_s15   ;;  %p2709_p13 = scmp.ge.s32.totalorder %s2193_s18, 2 }
 0x219   : > { %s1424_s17 = scalar_lea.sflag [#allocation5], %s1423_s4 }
 0x21a   : > { %p1875_p0 = pnand %p2709_p13, %p2298_p6 }
 0x21c   : > { %p1876_p5 = pneg %p1875_p0 }
 0x21e   : > { %2176 = dma.done.wait (%p1876_p5), %s1424_s17, 2048  }
 0x21f   : > { %2178 = vsyncadd (%p1876_p5), %s1424_s17, 4294965248  ;;  %s2710_s18 = sld [smem:[#allocation22_spill]]  ;;  %s2713_s15 = smov %s2185_s16 }
 0x220   : > { %s2711_s12 = sld [smem:[#allocation21_spill]] }
 0x221   : > { %s2712_s17 = sld [smem:[#allocation23_spill]] }
 0x225   : > { %p30_p7 = scmp.ge.s32.totalorder %s2710_s18, 4  }
 0x226   : > { %s2714_s16 = smov %s2711_s12 }
 0x227   :  { %32 = sbr.rel (!%p30_p7) target bundleno = 16 (0x10), region = 142 }
 0x22c   :  { %1430 = vsyncpa [#allocation4], 1 }
 0x22d   :  { %1432 = vsyncpa [#allocation4 + $0x1], 1 }
 0x22e   :  { %1433 = vsyncpa [#allocation7], 1 }
 0x22f   :  { %1435 = vsyncpa [#allocation7 + $0x1], 1 }
 0x230   :  { %1436 = vsyncpa [#allocation10], 1 }
 0x231   :  { %1437 = vsyncpa [#allocation13], 1 }
 0x232   :  { %1438 = vsyncpa [#allocation5], 1 }
 0x233   :  { %1440 = vsyncpa [#allocation5 + $0x1], 1 }

</bundles_post_ra>
